<compile_context>
chip_gen: v7x
topology: tpu7x:2x2x1
jax: 0.10.0
libtpu: 0.0.40
codegen_flags: <defaults>
</compile_context>

<pallas_src>
import numpy as np
import jax
import jax.numpy as jnp
from jax.experimental import pallas as pl
from jax.experimental.pallas import tpu as pltpu


# ----------------------------- fused Pallas kernel --------------------------

def gcn_group_kernel(x_ref, a_ref, idx_ref, mean_ref, rstd_ref,
                     w1t_ref, w1b_ref, b1_ref,
                     w2t_ref, w2b_ref, b2_ref,
                     w3t_ref, w3b_ref, b3_ref,
                     w4t_ref, w4b_ref, b4_ref,
                     wc1_ref, bc1_ref, alpha_ref, wc2_ref, bc2_ref,
                     o_ref):
    # One grid step == one (b, n) group of I nodes.
    x = x_ref[0]            # (I, D)  raw node features of this group
    a = a_ref[0]            # (I, 1)  diag(A) per node of this group

    # BatchNorm1d(in_dim, affine=False), training-mode batch statistics.
    # mean / rstd are precomputed over the full B*N*I slab in the wrapper
    # (the only cross-group dependency), kept in f32.
    h = (x - mean_ref[...]) * rstd_ref[...]

    def graph_conv(h, wt_ref, wb_ref, b_ref):
        # relu(h @ W_top + diag(A) * (h @ W_bot) + b)
        # == relu(cat([h, diag(A)*h], -1) @ W + b), without the lane concat.
        hd = h.astype(wt_ref.dtype)     # cast only at the MXU boundary
        top = jnp.dot(hd, wt_ref[...], preferred_element_type=jnp.float32)
        bot = jnp.dot(hd, wb_ref[...], preferred_element_type=jnp.float32)
        return jnp.maximum(top + a * bot + b_ref[...], 0.0)

    h = graph_conv(h, w1t_ref, w1b_ref, b1_ref)
    h = graph_conv(h, w2t_ref, w2b_ref, b2_ref)
    h = graph_conv(h, w3t_ref, w3b_ref, b3_ref)
    h = graph_conv(h, w4t_ref, w4b_ref, b4_ref)   # (I, dout), f32

    # one_hop gather: block-diagonal per group, so build a tiny (k1, I)
    # one-hot from the int32 indices and select rows with one exact MXU pass
    # (one 1.0 per row -> exact in f32).  Linear in node count, no (M2, M)
    # matrix ever exists.
    n_i = x_ref.shape[1]
    k1 = idx_ref.shape[1]
    idx = idx_ref[0]                                           # (k1, 1) int32
    cols = jax.lax.broadcasted_iota(jnp.int32, (k1, n_i), 1)   # (k1, I)
    onehot = (cols == idx).astype(jnp.float32)
    g = jnp.dot(onehot, h, preferred_element_type=jnp.float32)  # (k1, dout)

    # classifier: Linear -> PReLU(per-channel) -> Linear, exact-sized output.
    z = jnp.dot(g.astype(wc1_ref.dtype), wc1_ref[...],
                preferred_element_type=jnp.float32) + bc1_ref[...]
    z = jnp.maximum(z, 0.0) + alpha_ref[...] * jnp.minimum(z, 0.0)
    y = jnp.dot(z.astype(wc2_ref.dtype), wc2_ref[...],
                preferred_element_type=jnp.float32) + bc2_ref[...]
    o_ref[0] = y.astype(o_ref.dtype)


# ----------------------------- wrapper --------------------------------------

def gcn_forward(x, A, one_hop_idx, params, *, k1, matmul_dtype=jnp.float32):
    """x: (B,N,I,D)  A: (B,N,I,I)  one_hop_idx: (B,N,k1) sorted int32 local
    indices (equivalent to a boolean one_hop_mask with exactly k1 Trues per
    (b,n)).  matmul_dtype=jnp.bfloat16 enables the bf16-at-MXU perf mode for
    v6e/v7x (f32 accumulation, f32 elementwise)."""
    B, N, I, D = x.shape
    G = B * N
    M = G * I

    xg = x.reshape(G, I, D).astype(jnp.float32)
    # MeanAggregator's einsum('bnii,bnid->bnid') only reads A[b,n,i,i].
    diag_a = jnp.diagonal(A, axis1=2, axis2=3).reshape(G, I, 1).astype(jnp.float32)
    idx = one_hop_idx.reshape(G, k1, 1).astype(jnp.int32)

    # BatchNorm1d batch stats hoisted to one XLA reduce (f32).
    xf = xg.reshape(M, D)
    mean = jnp.mean(xf, axis=0, keepdims=True)
    var = jnp.mean(jnp.square(xf - mean), axis=0, keepdims=True)
    rstd = jax.lax.rsqrt(var + 1e-5)

    # Pre-split each GraphConv weight (2*din, dout) -> top/bot halves.
    conv_ws = []
    for (w, b) in params["convs"]:
        din = w.shape[0] // 2
        conv_ws.append((w[:din].astype(matmul_dtype),
                        w[din:].astype(matmul_dtype),
                        b.reshape(1, -1).astype(jnp.float32)))
    wc1, bc1, alpha, wc2, bc2 = params["classifier"]
    dout = wc1.shape[0]
    cls = (wc1.astype(matmul_dtype), bc1.reshape(1, -1).astype(jnp.float32),
           alpha.reshape(1, -1).astype(jnp.float32),
           wc2.astype(matmul_dtype), bc2.reshape(1, -1).astype(jnp.float32))

    # Argument packing: per-group tensors first, then grid-invariant params.
    const_args = [mean, rstd]
    for (wt, wb, b) in conv_ws:
        const_args += [wt, wb, b]
    const_args += list(cls)
    args = [xg, diag_a, idx] + const_args

    group_map = lambda g: (g, 0, 0)
    const_map = lambda g: (0, 0)          # all grid-invariant params are 2-D
    in_specs = [
        pl.BlockSpec((1, I, D), group_map),
        pl.BlockSpec((1, I, 1), group_map),
        pl.BlockSpec((1, k1, 1), group_map),
    ] + [pl.BlockSpec(a.shape, const_map) for a in const_args]
    out_spec = pl.BlockSpec((1, k1, 2), group_map)

    # Scheduler hint (cheap, helps XLA overlap the surrounding diag/reshape).
    flops = 0
    for (wt, wb, _) in conv_ws:
        di, do = wt.shape
        flops += 2 * 2 * M * di * do               # top + bot matmuls
    flops += 2 * G * k1 * I * dout                 # one-hot gather
    flops += 2 * G * k1 * dout * dout + 2 * G * k1 * dout * 2
    bytes_accessed = sum(int(a.size) * np.dtype(a.dtype).itemsize for a in args)
    bytes_accessed += G * k1 * 2 * 4
    cost = pl.CostEstimate(flops=int(flops), transcendentals=0,
                           bytes_accessed=int(bytes_accessed))

    out = pl.pallas_call(
        gcn_group_kernel,
        grid=(G,),
        in_specs=in_specs,
        out_specs=out_spec,
        out_shape=jax.ShapeDtypeStruct((G, k1, 2), jnp.float32),
        compiler_params=pltpu.CompilerParams(
            dimension_semantics=("parallel",),
            vmem_limit_bytes=32 * 1024 * 1024,
        ),
        cost_estimate=cost,
    )(*args)

    return out.reshape(B, N, k1, 2)


# ----------------------------- pure-JAX reference ---------------------------

def gcn_reference(x, A, one_hop_idx, params, *, k1):
    B, N, I, D = x.shape
    xf = x.reshape(-1, D)
    mean = jnp.mean(xf, axis=0)
    var = jnp.mean(jnp.square(xf - mean), axis=0)
    h = (xf - mean) / jnp.sqrt(var + 1e-5)
    diag_a = jnp.diagonal(A, axis1=2, axis2=3).reshape(-1, 1)
    for w, b in params["convs"]:
        xc = jnp.concatenate([h, diag_a * h], axis=-1)
        h = jnp.maximum(xc @ w + b, 0.0)
    dim_out = h.shape[-1]
    h = h.reshape(B, N, I, dim_out)
    h = jnp.take_along_axis(h, one_hop_idx[..., None], axis=2).reshape(-1, dim_out)
    wc1, bc1, alpha, wc2, bc2 = params["classifier"]
    z = h @ wc1 + bc1
    z = jnp.maximum(z, 0.0) + alpha * jnp.minimum(z, 0.0)
    y = z @ wc2 + bc2
    return y.reshape(B, N, k1, 2)


# ----------------------------- parameter init -------------------------------

def xavier_uniform(key, shape):
    fan_in, fan_out = shape
    bound = float(np.sqrt(6.0 / (fan_in + fan_out)))
    return jax.random.uniform(key, shape, jnp.float32, -bound, bound)


def xavier_normal_linear(key, in_dim, out_dim):
    # torch Linear weight is (out, in) with xavier_normal_; we return (in, out).
    std = float(np.sqrt(2.0 / (in_dim + out_dim)))
    w = std * jax.random.normal(key, (out_dim, in_dim), jnp.float32)
    return w.T


def make_params(key, in_dim, out_dim):
    keys = jax.random.split(key, 8)
    conv_dims = [(in_dim, in_dim), (in_dim, in_dim), (in_dim, out_dim), (out_dim, out_dim)]
    convs = []
    for k, (di, do) in zip(keys[:4], conv_dims):
        w = xavier_uniform(k, (2 * di, do))
        b = jnp.zeros((do,), jnp.float32)
        convs.append((w, b))
    w1 = xavier_normal_linear(keys[4], out_dim, out_dim)
    b1 = jnp.zeros((out_dim,), jnp.float32)
    alpha = jnp.full((out_dim,), 0.25, jnp.float32)   # PReLU(out_dim) default init
    w2 = xavier_normal_linear(keys[5], out_dim, 2)
    b2 = jnp.zeros((2,), jnp.float32)
    return {"convs": convs, "classifier": (w1, b1, alpha, w2, b2)}


# ----------------------------- main ------------------------------------------

if __name__ == "__main__":
    B, N, I = 2, 3, 8
    in_dim, out_dim, k1 = 32, 16, 4

    root = jax.random.PRNGKey(0)
    kx, kA, kidx, kp = jax.random.split(root, 4)

    x = jax.random.normal(kx, (B, N, I, in_dim), jnp.float32)
    A = jax.random.uniform(kA, (B, N, I, I), jnp.float32)

    # one_hop_mask: exactly k1 True per (b, n); represented as sorted local
    # indices so the gather matches boolean-mask row-major ordering.
    perm_scores = jax.random.uniform(kidx, (B, N, I))
    one_hop_idx = jnp.sort(jnp.argsort(perm_scores, axis=-1)[..., :k1], axis=-1)
    one_hop_idx = one_hop_idx.astype(jnp.int32)

    params = make_params(kp, in_dim, out_dim)

    ref = gcn_reference(x, A, one_hop_idx, params, k1=k1)

    # f32 MXU path (exact module semantics).
    fwd_f32 = jax.jit(lambda x, A, idx: gcn_forward(x, A, idx, params, k1=k1,
                                                    matmul_dtype=jnp.float32))
    out_f32 = fwd_f32(x, A, one_hop_idx)
    jax.block_until_ready(out_f32)
    assert out_f32.shape == (B, N, k1, 2)
    np.testing.assert_allclose(np.asarray(out_f32), np.asarray(ref), rtol=2e-2, atol=2e-2)

    # bf16-at-MXU perf mode (v6e/v7x): sanity check against the f32 reference.
    fwd_bf16 = jax.jit(lambda x, A, idx: gcn_forward(x, A, idx, params, k1=k1,
                                                     matmul_dtype=jnp.bfloat16))
    out_bf16 = fwd_bf16(x, A, one_hop_idx)
    jax.block_until_ready(out_bf16)
    np.testing.assert_allclose(np.asarray(out_bf16), np.asarray(ref), rtol=1e-1, atol=1e-1)

    # TODO(synk): BatchNorm uses training-mode batch stats (matches the module's
    # default train=True call path); eval-mode running stats are not modeled.
    print("KERNEL_OK")
</pallas_src>

<mosaic_0001>
module attributes {stable_mosaic.version = 11 : i64} {
  func.func @gcn_group_kernel(%arg0: i32, %arg1: memref<1x8x32xf32, #tpu.memory_space<vmem>>, %arg2: memref<1x8x1xf32, #tpu.memory_space<vmem>>, %arg3: memref<1x4x1xi32, #tpu.memory_space<vmem>>, %arg4: memref<1x32xf32, #tpu.memory_space<vmem>>, %arg5: memref<1x32xf32, #tpu.memory_space<vmem>>, %arg6: memref<32x32xf32, #tpu.memory_space<vmem>>, %arg7: memref<32x32xf32, #tpu.memory_space<vmem>>, %arg8: memref<1x32xf32, #tpu.memory_space<vmem>>, %arg9: memref<32x32xf32, #tpu.memory_space<vmem>>, %arg10: memref<32x32xf32, #tpu.memory_space<vmem>>, %arg11: memref<1x32xf32, #tpu.memory_space<vmem>>, %arg12: memref<32x16xf32, #tpu.memory_space<vmem>>, %arg13: memref<32x16xf32, #tpu.memory_space<vmem>>, %arg14: memref<1x16xf32, #tpu.memory_space<vmem>>, %arg15: memref<16x16xf32, #tpu.memory_space<vmem>>, %arg16: memref<16x16xf32, #tpu.memory_space<vmem>>, %arg17: memref<1x16xf32, #tpu.memory_space<vmem>>, %arg18: memref<16x16xf32, #tpu.memory_space<vmem>>, %arg19: memref<1x16xf32, #tpu.memory_space<vmem>>, %arg20: memref<1x16xf32, #tpu.memory_space<vmem>>, %arg21: memref<16x2xf32, #tpu.memory_space<vmem>>, %arg22: memref<1x2xf32, #tpu.memory_space<vmem>>, %arg23: memref<1x4x2xf32, #tpu.memory_space<vmem>>) attributes {dimension_semantics = [#tpu.dimension_semantics<parallel>], iteration_bounds = array<i64: 6>, scalar_prefetch = 0 : i64, scratch_operands = 0 : i64, tpu.core_type = #tpu.core_type<tc>, window_params = [{transform_indices = @transform_0, window_bounds = array<i64: 1, 8, 32>}, {transform_indices = @transform_1, window_bounds = array<i64: 1, 8, 1>}, {transform_indices = @transform_2, window_bounds = array<i64: 1, 4, 1>}, {pipeline_mode = #tpu.pipeline_mode<synchronous>, transform_indices = @transform_3, window_bounds = array<i64: 1, 32>}, {pipeline_mode = #tpu.pipeline_mode<synchronous>, transform_indices = @transform_4, window_bounds = array<i64: 1, 32>}, {pipeline_mode = #tpu.pipeline_mode<synchronous>, transform_indices = @transform_5, window_bounds = array<i64: 32, 32>}, {pipeline_mode = #tpu.pipeline_mode<synchronous>, transform_indices = @transform_6, window_bounds = array<i64: 32, 32>}, {pipeline_mode = #tpu.pipeline_mode<synchronous>, transform_indices = @transform_7, window_bounds = array<i64: 1, 32>}, {pipeline_mode = #tpu.pipeline_mode<synchronous>, transform_indices = @transform_8, window_bounds = array<i64: 32, 32>}, {pipeline_mode = #tpu.pipeline_mode<synchronous>, transform_indices = @transform_9, window_bounds = array<i64: 32, 32>}, {pipeline_mode = #tpu.pipeline_mode<synchronous>, transform_indices = @transform_10, window_bounds = array<i64: 1, 32>}, {pipeline_mode = #tpu.pipeline_mode<synchronous>, transform_indices = @transform_11, window_bounds = array<i64: 32, 16>}, {pipeline_mode = #tpu.pipeline_mode<synchronous>, transform_indices = @transform_12, window_bounds = array<i64: 32, 16>}, {pipeline_mode = #tpu.pipeline_mode<synchronous>, transform_indices = @transform_13, window_bounds = array<i64: 1, 16>}, {pipeline_mode = #tpu.pipeline_mode<synchronous>, transform_indices = @transform_14, window_bounds = array<i64: 16, 16>}, {pipeline_mode = #tpu.pipeline_mode<synchronous>, transform_indices = @transform_15, window_bounds = array<i64: 16, 16>}, {pipeline_mode = #tpu.pipeline_mode<synchronous>, transform_indices = @transform_16, window_bounds = array<i64: 1, 16>}, {pipeline_mode = #tpu.pipeline_mode<synchronous>, transform_indices = @transform_17, window_bounds = array<i64: 16, 16>}, {pipeline_mode = #tpu.pipeline_mode<synchronous>, transform_indices = @transform_18, window_bounds = array<i64: 1, 16>}, {pipeline_mode = #tpu.pipeline_mode<synchronous>, transform_indices = @transform_19, window_bounds = array<i64: 1, 16>}, {pipeline_mode = #tpu.pipeline_mode<synchronous>, transform_indices = @transform_20, window_bounds = array<i64: 16, 2>}, {pipeline_mode = #tpu.pipeline_mode<synchronous>, transform_indices = @transform_21, window_bounds = array<i64: 1, 2>}, {transform_indices = @transform_22, window_bounds = array<i64: 1, 4, 2>}]} {
    %c0 = arith.constant 0 : index
    %c0_0 = arith.constant 0 : index
    %c0_1 = arith.constant 0 : index
    %0 = vector.load %arg1[%c0, %c0_0, %c0_1] : memref<1x8x32xf32, #tpu.memory_space<vmem>>, vector<1x8x32xf32>
    %1 = vector.shape_cast %0 : vector<1x8x32xf32> to vector<8x32xf32>
    %c0_2 = arith.constant 0 : index
    %c0_3 = arith.constant 0 : index
    %c0_4 = arith.constant 0 : index
    %2 = vector.load %arg2[%c0_2, %c0_3, %c0_4] : memref<1x8x1xf32, #tpu.memory_space<vmem>>, vector<1x8x1xf32>
    %3 = vector.shape_cast %2 : vector<1x8x1xf32> to vector<8x1xf32>
    %c0_5 = arith.constant 0 : index
    %c0_6 = arith.constant 0 : index
    %4 = vector.load %arg4[%c0_5, %c0_6] : memref<1x32xf32, #tpu.memory_space<vmem>>, vector<1x32xf32>
    %5 = vector.broadcast %4 : vector<1x32xf32> to vector<8x32xf32>
    %6 = arith.subf %1, %5 : vector<8x32xf32>
    %c0_7 = arith.constant 0 : index
    %c0_8 = arith.constant 0 : index
    %7 = vector.load %arg5[%c0_7, %c0_8] : memref<1x32xf32, #tpu.memory_space<vmem>>, vector<1x32xf32>
    %8 = vector.broadcast %7 : vector<1x32xf32> to vector<8x32xf32>
    %9 = arith.mulf %6, %8 : vector<8x32xf32>
    %c0_9 = arith.constant 0 : index
    %c0_10 = arith.constant 0 : index
    %10 = vector.load %arg6[%c0_9, %c0_10] : memref<32x32xf32, #tpu.memory_space<vmem>>, vector<32x32xf32>
    %cst = arith.constant dense<0.000000e+00> : vector<8x32xf32>
    %11 = tpu.matmul %9, %10, %cst {dimension_numbers = #tpu.dot_dimension_numbers<[1], [0], [0], [1], [0, 0, 1, 1], [], []>} : vector<8x32xf32>, vector<32x32xf32>, vector<8x32xf32> -> vector<8x32xf32>
    %c0_11 = arith.constant 0 : index
    %c0_12 = arith.constant 0 : index
    %12 = vector.load %arg7[%c0_11, %c0_12] : memref<32x32xf32, #tpu.memory_space<vmem>>, vector<32x32xf32>
    %cst_13 = arith.constant dense<0.000000e+00> : vector<8x32xf32>
    %13 = tpu.matmul %9, %12, %cst_13 {dimension_numbers = #tpu.dot_dimension_numbers<[1], [0], [0], [1], [0, 0, 1, 1], [], []>} : vector<8x32xf32>, vector<32x32xf32>, vector<8x32xf32> -> vector<8x32xf32>
    %14 = vector.broadcast %3 : vector<8x1xf32> to vector<8x32xf32>
    %15 = arith.mulf %14, %13 : vector<8x32xf32>
    %16 = arith.addf %11, %15 : vector<8x32xf32>
    %c0_14 = arith.constant 0 : index
    %c0_15 = arith.constant 0 : index
    %17 = vector.load %arg8[%c0_14, %c0_15] : memref<1x32xf32, #tpu.memory_space<vmem>>, vector<1x32xf32>
    %18 = vector.broadcast %17 : vector<1x32xf32> to vector<8x32xf32>
    %19 = arith.addf %16, %18 : vector<8x32xf32>
    %cst_16 = arith.constant 0.000000e+00 : f32
    %20 = vector.broadcast %cst_16 : f32 to vector<8x32xf32>
    %21 = arith.maximumf %19, %20 : vector<8x32xf32>
    %c0_17 = arith.constant 0 : index
    %c0_18 = arith.constant 0 : index
    %22 = vector.load %arg9[%c0_17, %c0_18] : memref<32x32xf32, #tpu.memory_space<vmem>>, vector<32x32xf32>
    %cst_19 = arith.constant dense<0.000000e+00> : vector<8x32xf32>
    %23 = tpu.matmul %21, %22, %cst_19 {dimension_numbers = #tpu.dot_dimension_numbers<[1], [0], [0], [1], [0, 0, 1, 1], [], []>} : vector<8x32xf32>, vector<32x32xf32>, vector<8x32xf32> -> vector<8x32xf32>
    %c0_20 = arith.constant 0 : index
    %c0_21 = arith.constant 0 : index
    %24 = vector.load %arg10[%c0_20, %c0_21] : memref<32x32xf32, #tpu.memory_space<vmem>>, vector<32x32xf32>
    %cst_22 = arith.constant dense<0.000000e+00> : vector<8x32xf32>
    %25 = tpu.matmul %21, %24, %cst_22 {dimension_numbers = #tpu.dot_dimension_numbers<[1], [0], [0], [1], [0, 0, 1, 1], [], []>} : vector<8x32xf32>, vector<32x32xf32>, vector<8x32xf32> -> vector<8x32xf32>
    %26 = vector.broadcast %3 : vector<8x1xf32> to vector<8x32xf32>
    %27 = arith.mulf %26, %25 : vector<8x32xf32>
    %28 = arith.addf %23, %27 : vector<8x32xf32>
    %c0_23 = arith.constant 0 : index
    %c0_24 = arith.constant 0 : index
    %29 = vector.load %arg11[%c0_23, %c0_24] : memref<1x32xf32, #tpu.memory_space<vmem>>, vector<1x32xf32>
    %30 = vector.broadcast %29 : vector<1x32xf32> to vector<8x32xf32>
    %31 = arith.addf %28, %30 : vector<8x32xf32>
    %cst_25 = arith.constant 0.000000e+00 : f32
    %32 = vector.broadcast %cst_25 : f32 to vector<8x32xf32>
    %33 = arith.maximumf %31, %32 : vector<8x32xf32>
    %c0_26 = arith.constant 0 : index
    %c0_27 = arith.constant 0 : index
    %34 = vector.load %arg12[%c0_26, %c0_27] : memref<32x16xf32, #tpu.memory_space<vmem>>, vector<32x16xf32>
    %cst_28 = arith.constant dense<0.000000e+00> : vector<8x16xf32>
    %35 = tpu.matmul %33, %34, %cst_28 {dimension_numbers = #tpu.dot_dimension_numbers<[1], [0], [0], [1], [0, 0, 1, 1], [], []>} : vector<8x32xf32>, vector<32x16xf32>, vector<8x16xf32> -> vector<8x16xf32>
    %c0_29 = arith.constant 0 : index
    %c0_30 = arith.constant 0 : index
    %36 = vector.load %arg13[%c0_29, %c0_30] : memref<32x16xf32, #tpu.memory_space<vmem>>, vector<32x16xf32>
    %cst_31 = arith.constant dense<0.000000e+00> : vector<8x16xf32>
    %37 = tpu.matmul %33, %36, %cst_31 {dimension_numbers = #tpu.dot_dimension_numbers<[1], [0], [0], [1], [0, 0, 1, 1], [], []>} : vector<8x32xf32>, vector<32x16xf32>, vector<8x16xf32> -> vector<8x16xf32>
    %38 = vector.broadcast %3 : vector<8x1xf32> to vector<8x16xf32>
    %39 = arith.mulf %38, %37 : vector<8x16xf32>
    %40 = arith.addf %35, %39 : vector<8x16xf32>
    %c0_32 = arith.constant 0 : index
    %c0_33 = arith.constant 0 : index
    %41 = vector.load %arg14[%c0_32, %c0_33] : memref<1x16xf32, #tpu.memory_space<vmem>>, vector<1x16xf32>
    %42 = vector.broadcast %41 : vector<1x16xf32> to vector<8x16xf32>
    %43 = arith.addf %40, %42 : vector<8x16xf32>
    %cst_34 = arith.constant 0.000000e+00 : f32
    %44 = vector.broadcast %cst_34 : f32 to vector<8x16xf32>
    %45 = arith.maximumf %43, %44 : vector<8x16xf32>
    %c0_35 = arith.constant 0 : index
    %c0_36 = arith.constant 0 : index
    %46 = vector.load %arg15[%c0_35, %c0_36] : memref<16x16xf32, #tpu.memory_space<vmem>>, vector<16x16xf32>
    %cst_37 = arith.constant dense<0.000000e+00> : vector<8x16xf32>
    %47 = tpu.matmul %45, %46, %cst_37 {dimension_numbers = #tpu.dot_dimension_numbers<[1], [0], [0], [1], [0, 0, 1, 1], [], []>} : vector<8x16xf32>, vector<16x16xf32>, vector<8x16xf32> -> vector<8x16xf32>
    %c0_38 = arith.constant 0 : index
    %c0_39 = arith.constant 0 : index
    %48 = vector.load %arg16[%c0_38, %c0_39] : memref<16x16xf32, #tpu.memory_space<vmem>>, vector<16x16xf32>
    %cst_40 = arith.constant dense<0.000000e+00> : vector<8x16xf32>
    %49 = tpu.matmul %45, %48, %cst_40 {dimension_numbers = #tpu.dot_dimension_numbers<[1], [0], [0], [1], [0, 0, 1, 1], [], []>} : vector<8x16xf32>, vector<16x16xf32>, vector<8x16xf32> -> vector<8x16xf32>
    %50 = vector.broadcast %3 : vector<8x1xf32> to vector<8x16xf32>
    %51 = arith.mulf %50, %49 : vector<8x16xf32>
    %52 = arith.addf %47, %51 : vector<8x16xf32>
    %c0_41 = arith.constant 0 : index
    %c0_42 = arith.constant 0 : index
    %53 = vector.load %arg17[%c0_41, %c0_42] : memref<1x16xf32, #tpu.memory_space<vmem>>, vector<1x16xf32>
    %54 = vector.broadcast %53 : vector<1x16xf32> to vector<8x16xf32>
    %55 = arith.addf %52, %54 : vector<8x16xf32>
    %cst_43 = arith.constant 0.000000e+00 : f32
    %56 = vector.broadcast %cst_43 : f32 to vector<8x16xf32>
    %57 = arith.maximumf %55, %56 : vector<8x16xf32>
    %c0_44 = arith.constant 0 : index
    %c0_45 = arith.constant 0 : index
    %c0_46 = arith.constant 0 : index
    %58 = vector.load %arg3[%c0_44, %c0_45, %c0_46] : memref<1x4x1xi32, #tpu.memory_space<vmem>>, vector<1x4x1xi32>
    %59 = vector.shape_cast %58 : vector<1x4x1xi32> to vector<4x1xi32>
    %60 = tpu.iota {dimensions = array<i32: 1>} : vector<4x8xi32>
    %61 = vector.broadcast %59 : vector<4x1xi32> to vector<4x8xi32>
    %62 = arith.cmpi eq, %60, %61 : vector<4x8xi32>
    %63 = arith.extui %62 : vector<4x8xi1> to vector<4x8xi32>
    %64 = arith.sitofp %63 : vector<4x8xi32> to vector<4x8xf32>
    %cst_47 = arith.constant dense<0.000000e+00> : vector<4x16xf32>
    %65 = tpu.matmul %64, %57, %cst_47 {dimension_numbers = #tpu.dot_dimension_numbers<[1], [0], [0], [1], [0, 0, 1, 1], [], []>} : vector<4x8xf32>, vector<8x16xf32>, vector<4x16xf32> -> vector<4x16xf32>
    %c0_48 = arith.constant 0 : index
    %c0_49 = arith.constant 0 : index
    %66 = vector.load %arg18[%c0_48, %c0_49] : memref<16x16xf32, #tpu.memory_space<vmem>>, vector<16x16xf32>
    %cst_50 = arith.constant dense<0.000000e+00> : vector<4x16xf32>
    %67 = tpu.matmul %65, %66, %cst_50 {dimension_numbers = #tpu.dot_dimension_numbers<[1], [0], [0], [1], [0, 0, 1, 1], [], []>} : vector<4x16xf32>, vector<16x16xf32>, vector<4x16xf32> -> vector<4x16xf32>
    %c0_51 = arith.constant 0 : index
    %c0_52 = arith.constant 0 : index
    %68 = vector.load %arg19[%c0_51, %c0_52] : memref<1x16xf32, #tpu.memory_space<vmem>>, vector<1x16xf32>
    %69 = vector.broadcast %68 : vector<1x16xf32> to vector<4x16xf32>
    %70 = arith.addf %67, %69 : vector<4x16xf32>
    %cst_53 = arith.constant 0.000000e+00 : f32
    %71 = vector.broadcast %cst_53 : f32 to vector<4x16xf32>
    %72 = arith.maximumf %70, %71 : vector<4x16xf32>
    %c0_54 = arith.constant 0 : index
    %c0_55 = arith.constant 0 : index
    %73 = vector.load %arg20[%c0_54, %c0_55] : memref<1x16xf32, #tpu.memory_space<vmem>>, vector<1x16xf32>
    %cst_56 = arith.constant 0.000000e+00 : f32
    %74 = vector.broadcast %cst_56 : f32 to vector<4x16xf32>
    %75 = arith.minimumf %70, %74 : vector<4x16xf32>
    %76 = vector.broadcast %73 : vector<1x16xf32> to vector<4x16xf32>
    %77 = arith.mulf %76, %75 : vector<4x16xf32>
    %78 = arith.addf %72, %77 : vector<4x16xf32>
    %c0_57 = arith.constant 0 : index
    %c0_58 = arith.constant 0 : index
    %79 = vector.load %arg21[%c0_57, %c0_58] : memref<16x2xf32, #tpu.memory_space<vmem>>, vector<16x2xf32>
    %cst_59 = arith.constant dense<0.000000e+00> : vector<4x2xf32>
    %80 = tpu.matmul %78, %79, %cst_59 {dimension_numbers = #tpu.dot_dimension_numbers<[1], [0], [0], [1], [0, 0, 1, 1], [], []>} : vector<4x16xf32>, vector<16x2xf32>, vector<4x2xf32> -> vector<4x2xf32>
    %c0_60 = arith.constant 0 : index
    %c0_61 = arith.constant 0 : index
    %81 = vector.load %arg22[%c0_60, %c0_61] : memref<1x2xf32, #tpu.memory_space<vmem>>, vector<1x2xf32>
    %82 = vector.broadcast %81 : vector<1x2xf32> to vector<4x2xf32>
    %83 = arith.addf %80, %82 : vector<4x2xf32>
    %c0_62 = arith.constant 0 : index
    %c0_63 = arith.constant 0 : index
    %c0_64 = arith.constant 0 : index
    %84 = vector.load %arg23[%c0_62, %c0_63, %c0_64] : memref<1x4x2xf32, #tpu.memory_space<vmem>>, vector<1x4x2xf32>
    %85 = vector.shape_cast %84 : vector<1x4x2xf32> to vector<4x2xf32>
    %86 = vector.shape_cast %83 : vector<4x2xf32> to vector<1x4x2xf32>
    tpu.vector_store %arg23[%c0_62, %c0_63, %c0_64], %86 {strides = array<i32>} : memref<1x4x2xf32, #tpu.memory_space<vmem>>, vector<1x4x2xf32>,
    return
  }
  func.func @transform_0(%arg0: i32) -> (i32, i32, i32) {
    %c0_i32 = arith.constant 0 : i32
    %c0_i32_0 = arith.constant 0 : i32
    %c0_i32_1 = arith.constant 0 : i32
    return %arg0, %c0_i32, %c0_i32_0 : i32, i32, i32
  }
  func.func @transform_1(%arg0: i32) -> (i32, i32, i32) {
    %c0_i32 = arith.constant 0 : i32
    %c0_i32_0 = arith.constant 0 : i32
    %c0_i32_1 = arith.constant 0 : i32
    return %arg0, %c0_i32, %c0_i32_0 : i32, i32, i32
  }
  func.func @transform_2(%arg0: i32) -> (i32, i32, i32) {
    %c0_i32 = arith.constant 0 : i32
    %c0_i32_0 = arith.constant 0 : i32
    %c0_i32_1 = arith.constant 0 : i32
    return %arg0, %c0_i32, %c0_i32_0 : i32, i32, i32
  }
  func.func @transform_3(%arg0: i32) -> (i32, i32) {
    %c0_i32 = arith.constant 0 : i32
    %c0_i32_0 = arith.constant 0 : i32
    %c0_i32_1 = arith.constant 0 : i32
    return %c0_i32, %c0_i32_0 : i32, i32
  }
  func.func @transform_4(%arg0: i32) -> (i32, i32) {
    %c0_i32 = arith.constant 0 : i32
    %c0_i32_0 = arith.constant 0 : i32
    %c0_i32_1 = arith.constant 0 : i32
    return %c0_i32, %c0_i32_0 : i32, i32
  }
  func.func @transform_5(%arg0: i32) -> (i32, i32) {
    %c0_i32 = arith.constant 0 : i32
    %c0_i32_0 = arith.constant 0 : i32
    %c0_i32_1 = arith.constant 0 : i32
    return %c0_i32, %c0_i32_0 : i32, i32
  }
  func.func @transform_6(%arg0: i32) -> (i32, i32) {
    %c0_i32 = arith.constant 0 : i32
    %c0_i32_0 = arith.constant 0 : i32
    %c0_i32_1 = arith.constant 0 : i32
    return %c0_i32, %c0_i32_0 : i32, i32
  }
  func.func @transform_7(%arg0: i32) -> (i32, i32) {
    %c0_i32 = arith.constant 0 : i32
    %c0_i32_0 = arith.constant 0 : i32
    %c0_i32_1 = arith.constant 0 : i32
    return %c0_i32, %c0_i32_0 : i32, i32
  }
  func.func @transform_8(%arg0: i32) -> (i32, i32) {
    %c0_i32 = arith.constant 0 : i32
    %c0_i32_0 = arith.constant 0 : i32
    %c0_i32_1 = arith.constant 0 : i32
    return %c0_i32, %c0_i32_0 : i32, i32
  }
  func.func @transform_9(%arg0: i32) -> (i32, i32) {
    %c0_i32 = arith.constant 0 : i32
    %c0_i32_0 = arith.constant 0 : i32
    %c0_i32_1 = arith.constant 0 : i32
    return %c0_i32, %c0_i32_0 : i32, i32
  }
  func.func @transform_10(%arg0: i32) -> (i32, i32) {
    %c0_i32 = arith.constant 0 : i32
    %c0_i32_0 = arith.constant 0 : i32
    %c0_i32_1 = arith.constant 0 : i32
    return %c0_i32, %c0_i32_0 : i32, i32
  }
  func.func @transform_11(%arg0: i32) -> (i32, i32) {
    %c0_i32 = arith.constant 0 : i32
    %c0_i32_0 = arith.constant 0 : i32
    %c0_i32_1 = arith.constant 0 : i32
    return %c0_i32, %c0_i32_0 : i32, i32
  }
  func.func @transform_12(%arg0: i32) -> (i32, i32) {
    %c0_i32 = arith.constant 0 : i32
    %c0_i32_0 = arith.constant 0 : i32
    %c0_i32_1 = arith.constant 0 : i32
    return %c0_i32, %c0_i32_0 : i32, i32
  }
  func.func @transform_13(%arg0: i32) -> (i32, i32) {
    %c0_i32 = arith.constant 0 : i32
    %c0_i32_0 = arith.constant 0 : i32
    %c0_i32_1 = arith.constant 0 : i32
    return %c0_i32, %c0_i32_0 : i32, i32
  }
  func.func @transform_14(%arg0: i32) -> (i32, i32) {
    %c0_i32 = arith.constant 0 : i32
    %c0_i32_0 = arith.constant 0 : i32
    %c0_i32_1 = arith.constant 0 : i32
    return %c0_i32, %c0_i32_0 : i32, i32
  }
  func.func @transform_15(%arg0: i32) -> (i32, i32) {
    %c0_i32 = arith.constant 0 : i32
    %c0_i32_0 = arith.constant 0 : i32
    %c0_i32_1 = arith.constant 0 : i32
    return %c0_i32, %c0_i32_0 : i32, i32
  }
  func.func @transform_16(%arg0: i32) -> (i32, i32) {
    %c0_i32 = arith.constant 0 : i32
    %c0_i32_0 = arith.constant 0 : i32
    %c0_i32_1 = arith.constant 0 : i32
    return %c0_i32, %c0_i32_0 : i32, i32
  }
  func.func @transform_17(%arg0: i32) -> (i32, i32) {
    %c0_i32 = arith.constant 0 : i32
    %c0_i32_0 = arith.constant 0 : i32
    %c0_i32_1 = arith.constant 0 : i32
    return %c0_i32, %c0_i32_0 : i32, i32
  }
  func.func @transform_18(%arg0: i32) -> (i32, i32) {
    %c0_i32 = arith.constant 0 : i32
    %c0_i32_0 = arith.constant 0 : i32
    %c0_i32_1 = arith.constant 0 : i32
    return %c0_i32, %c0_i32_0 : i32, i32
  }
  func.func @transform_19(%arg0: i32) -> (i32, i32) {
    %c0_i32 = arith.constant 0 : i32
    %c0_i32_0 = arith.constant 0 : i32
    %c0_i32_1 = arith.constant 0 : i32
    return %c0_i32, %c0_i32_0 : i32, i32
  }
  func.func @transform_20(%arg0: i32) -> (i32, i32) {
    %c0_i32 = arith.constant 0 : i32
    %c0_i32_0 = arith.constant 0 : i32
    %c0_i32_1 = arith.constant 0 : i32
    return %c0_i32, %c0_i32_0 : i32, i32
  }
  func.func @transform_21(%arg0: i32) -> (i32, i32) {
    %c0_i32 = arith.constant 0 : i32
    %c0_i32_0 = arith.constant 0 : i32
    %c0_i32_1 = arith.constant 0 : i32
    return %c0_i32, %c0_i32_0 : i32, i32
  }
  func.func @transform_22(%arg0: i32) -> (i32, i32, i32) {
    %c0_i32 = arith.constant 0 : i32
    %c0_i32_0 = arith.constant 0 : i32
    %c0_i32_1 = arith.constant 0 : i32
    return %arg0, %c0_i32, %c0_i32_0 : i32, i32, i32
  }
}

</mosaic_0001>

<bundles_post_ra>
// kernel: _lambda_.1
= control target key start
LH: loop header
LB: loop body
LE: loop exit
PB: predicated region body
PF: predicated region fallthrough
CT: control target
= control target key end

     0   :  { %s2288_s0 = inlined_call_operand.vmem [shape: f32[6,8,32], index: 0, kind: input, shape index: {}]   ;;  %s2289_s1 = inlined_call_operand.vmem [shape: f32[6,8,1], index: 1, kind: input, shape index: {}]   ;;  %s2290_s2 = inlined_call_operand.vmem [shape: s32[6,4,1], index: 2, kind: input, shape index: {}]   ;;  %s2291_s3 = inlined_call_operand.vmem [shape: f32[1,32], index: 3, kind: input, shape index: {}]   ;;  %s2292_s4 = inlined_call_operand.vmem [shape: f32[1,32], index: 4, kind: input, shape index: {}]   ;;  %s2293_s5 = inlined_call_operand.vmem [shape: f32[32,32], index: 5, kind: input, shape index: {}]   ;;  %s2294_s6 = inlined_call_operand.vmem [shape: f32[32,32], index: 6, kind: input, shape index: {}]   ;;  %s2295_s7 = inlined_call_operand.vmem [shape: f32[1,32], index: 7, kind: input, shape index: {}, may-alias: {7,10}]   ;;  %s2296_s8 = inlined_call_operand.vmem [shape: f32[32,32], index: 8, kind: input, shape index: {}]   ;;  %s2297_s9 = inlined_call_operand.vmem [shape: f32[32,32], index: 9, kind: input, shape index: {}]   ;;  %s2298_s10 = inlined_call_operand.vmem [shape: f32[1,32], index: 10, kind: input, shape index: {}, may-alias: {7,10}]   ;;  %s2299_s11 = inlined_call_operand.vmem [shape: f32[32,16], index: 11, kind: input, shape index: {}]   ;;  %s2300_s12 = inlined_call_operand.vmem [shape: f32[32,16], index: 12, kind: input, shape index: {}]   ;;  %s2301_s13 = inlined_call_operand.vmem [shape: f32[1,16], index: 13, kind: input, shape index: {}, may-alias: {13,16,18}]   ;;  %s2302_s14 = inlined_call_operand.vmem [shape: f32[16,16], index: 14, kind: input, shape index: {}]   ;;  %s2303_s15 = inlined_call_operand.vmem [shape: f32[16,16], index: 15, kind: input, shape index: {}]   ;;  %s2304_s16 = inlined_call_operand.vmem [shape: f32[1,16], index: 16, kind: input, shape index: {}, may-alias: {13,16,18}]   ;;  %s2305_s17 = inlined_call_operand.vmem [shape: f32[16,16], index: 17, kind: input, shape index: {}]   ;;  %s2306_s18 = inlined_call_operand.vmem [shape: f32[1,16], index: 18, kind: input, shape index: {}, may-alias: {13,16,18}]   ;;  %s2307_s19 = inlined_call_operand.vmem [shape: f32[1,16], index: 19, kind: input, shape index: {}]   ;;  %s2308_s20 = inlined_call_operand.vmem [shape: f32[16,2], index: 20, kind: input, shape index: {}]   ;;  %s2309_s21 = inlined_call_operand.vmem [shape: f32[1,2], index: 21, kind: input, shape index: {}]   ;;  %s2310_s22 = inlined_call_operand.vmem [shape: f32[6,4,2], index: 22, kind: output, shape index: {}]  }
   0x1   :  { %2316 = sst [smem:[#allocation3_spill]] %s2288_s0 }
   0x2   :  { %2317 = sst [smem:[#allocation4_spill]] %s2289_s1 }
   0x3   :  { %2318 = sst [smem:[#allocation5_spill]] %s2290_s2 }
   0x4   :  { %2319 = sst [smem:[#allocation6_spill]] %s2291_s3  ;;  %s2078_s3 = smov 0  }
   0x5   :  { %2320 = sst [smem:[#allocation7_spill]] %s2292_s4 }
   0x6   :  { %2321 = sst [smem:[#allocation8_spill]] %s2293_s5 }
   0x7   :  { %2322 = sst [smem:[#allocation9_spill]] %s2294_s6 }
   0x8   :  { %2323 = sst [smem:[#allocation10_spill]] %s2307_s19 }
   0x9   :  { %2324 = sst [smem:[#allocation11_spill]] %s2309_s21 }
   0xa   :  { %2325 = sst [smem:[#allocation12_spill]] %s2310_s22 }
   0xb LB: > { %2326 = sst [smem:[#allocation2_spill]] %s1957_s3  ;;  %s1715_s28 = sadd.s32 4294967295, %s1957_s3   ;;  %s1957_s3 = sphi %s2078_s3, %s32_s3  }
   0xc   : > { %p1719_p0 = scmp.ge.s32.totalorder %s1957_s3, 1  ;;  %p629_p1 = scmp.lt.s32.totalorder %s1957_s3, 7 }
   0xe   : > { %p630_p2 = pnand %p1719_p0, %p629_p1 }
   0xf   : > { %s2327_s4 = sld [smem:[#allocation9_spill]] (!%p630_p2)  ;;  %s2328_s24 = sld [smem:[#allocation8_spill]] (!%p630_p2)  ;;  %v1959_v3 = vmov (!%p630_p2), 0.0|0.0   ;;  %vm1960_vm0 = vmmov (!%p630_p2), 0   ;;  %v1961_v11 = vmov (!%p630_p2), 0.0   ;;  %v1962_v13 = vmov (!%p630_p2), 0  }
  0x10   : > { %633 = sbr.rel (%p630_p2) target bundleno = 1559 (0x617), region = 108  ;;  %1890 = vmatprep.subr.bf16.mxu0 (!%p630_p2), %v1959_v3  ;;  %1896 = vmatprep.subr.bf16.mxu1 (!%p630_p2), %v1959_v3  ;;  %p697_p3 = scmp.lt.s32.totalorder (!%p630_p2), %s1715_s28, 5  ;;  %vm739_vm1 = vcmask (!%p630_p2), 261120   ;;  %v902_v22 = vld [vmem:[%s2297_s9] sm:$0xff] (!%p630_p2)  ;;  %v903_v23 = vld [vmem:[%s2297_s9 + $0x8] sm:$0xff] (!%p630_p2)  ;;  %v904_v28 = vld [vmem:[%s2297_s9 + $0x10] sm:$0xff] (!%p630_p2) }
  0x11   : > { %1799 = vmatprep.mubr.msk.f32.mxu0 (!%p630_p2), %vm1960_vm0, %v1961_v11  ;;  %1810 = vmatprep.mubr.msk.f32.mxu1 (!%p630_p2), %vm1960_vm0, %v1961_v11  ;;  %s2329_s26 = sld [smem:[#allocation6_spill]] (!%p630_p2)  ;;  %s2330_s30 = sld [smem:[#allocation3_spill]] (!%p630_p2)  ;;  %v898_v24 = vld [vmem:[%s2296_s8] sm:$0xff] (!%p630_p2)  ;;  %v1903_v25 = vpack.c.bf16 (!%p630_p2), %v903_v23, %v902_v22  ;;  %v899_v26 = vld [vmem:[%s2296_s8 + $0x8] sm:$0xff] (!%p630_p2)  ;;  %v905_v29 = vld [vmem:[%s2297_s9 + $0x18] sm:$0xff] (!%p630_p2)  ;;  %vm1224_vm2 = vcmask (!%p630_p2), 130048  }
  0x12   : > { %1950 = vset.pattern.permute.xlu0 (!%p630_p2), %v1962_v13  ;;  %s2332_s21 = sld [smem:[#allocation7_spill]] (!%p630_p2)  ;;  %s2333_s25 = sld [smem:[#allocation5_spill]] (!%p630_p2)  ;;  %v1909_v27 = vpack.c.bf16 (!%p630_p2), %v899_v26, %v898_v24  ;;  %v1906_v30 = vpack.c.bf16 (!%p630_p2), %v905_v29, %v904_v28  ;;  %v900_v31 = vld [vmem:[%s2296_s8 + $0x10] sm:$0xff] (!%p630_p2)  ;;  %v901_v32 = vld [vmem:[%s2296_s8 + $0x18] sm:$0xff] (!%p630_p2)  ;;  %v1728_v40 = vld [vmem:[%s2295_s7] ss:$0 sm:$0xff] (!%p630_p2) }
  0x13   : > { %v1912_v33 = vpack.c.bf16 (!%p630_p2), %v901_v32, %v900_v31  ;;  %v1063_v44 = vld [vmem:[%s2300_s12] sm:$0xff] (!%p630_p2)  ;;  %v1064_v45 = vld [vmem:[%s2300_s12 + $0x8] sm:$0xff] (!%p630_p2)  ;;  %v1065_v50 = vld [vmem:[%s2300_s12 + $0x10] sm:$0xff] (!%p630_p2)  ;;  %vm1387_vm4 = vcmask (!%p630_p2), 64512   ;;  %s2334_s1 = sld [smem:[#allocation10_spill]] (!%p630_p2)  ;;  %s2336_s22 = sld [smem:[#allocation12_spill]] (!%p630_p2) }
  0x14   : > { %v1059_v46 = vld [vmem:[%s2299_s11] sm:$0xff] (!%p630_p2)  ;;  %v1915_v47 = vpack.c.bf16 (!%p630_p2), %v1064_v45, %v1063_v44  ;;  %v1060_v48 = vld [vmem:[%s2299_s11 + $0x8] sm:$0xff] (!%p630_p2)  ;;  %v1066_v51 = vld [vmem:[%s2300_s12 + $0x18] sm:$0xff] (!%p630_p2)  ;;  %vm1636_vm5 = vcmask (!%p630_p2), 11264  }
  0x15   : > { %v735_v0 = vld [vmem:[%s2327_s4] sm:$0xff] (!%p630_p2)  ;;  %v736_v1 = vld [vmem:[%s2327_s4 + $0x8] sm:$0xff] (!%p630_p2)  ;;  %v737_v6 = vld [vmem:[%s2327_s4 + $0x10] sm:$0xff] (!%p630_p2)  ;;  %v1921_v49 = vpack.c.bf16 (!%p630_p2), %v1060_v48, %v1059_v46  ;;  %v1918_v52 = vpack.c.bf16 (!%p630_p2), %v1066_v51, %v1065_v50 }
  0x16   : > { %v731_v2 = vld [vmem:[%s2328_s24] sm:$0xff] (!%p630_p2)  ;;  %v1891_v4 = vpack.c.bf16 (!%p630_p2), %v736_v1, %v735_v0  ;;  %v732_v5 = vld [vmem:[%s2328_s24 + $0x8] sm:$0xff] (!%p630_p2)  ;;  %v738_v7 = vld [vmem:[%s2327_s4 + $0x18] sm:$0xff] (!%p630_p2)  ;;  %s2331_s4 = sld [smem:[#allocation4_spill]] (!%p630_p2) }
  0x17   : > { %v1897_v8 = vpack.c.bf16 %v732_v5, %v731_v2  ;;  %v733_v9 = vld [vmem:[%s2328_s24 + $0x10] sm:$0xff]  ;;  %v734_v10 = vld [vmem:[%s2328_s24 + $0x18] sm:$0xff]  ;;  %v1894_v12 = vpack.c.bf16 %v738_v7, %v737_v6  ;;  %s2339_s28 = smov (!%p697_p3, %s1715_s28), 5  ;;  %v1724_v15 = vld [vmem:[%s2329_s26] ss:$0 sm:$0xff] }
  0x18   : > { %1892 = vmatpush3.bf16.msra.mxu0 %v1891_v4  ;;  %v1900_v14 = vpack.c.bf16 %v734_v10, %v733_v9  ;;  %s1720_s5 = sshll.u32 %s2339_s28, 3  ;;  %s1722_s2 = sshll.u32 %s2339_s28, 2  ;;  %v1725_v17 = vld [vmem:[%s2332_s21] ss:$0 sm:$0xff]  ;;  %v1061_v53 = vld [vmem:[%s2299_s11 + $0x10] sm:$0xff]  ;;  %v1062_v54 = vld [vmem:[%s2299_s11 + $0x18] sm:$0xff] }
  0x19   : > { %1898 = vmatpush3.bf16.msra.mxu1 %v1897_v8  ;;  %1893 = vmatprep.subr.bf16.mxu0 %v1959_v3  ;;  %s700_s0 = scalar_lea.vmem %s2330_s30, %s1720_s5  ;;  %s708_s26 = scalar_lea.vmem %s2333_s25, %s1722_s2  ;;  %v1924_v55 = vpack.c.bf16 %v1062_v54, %v1061_v53  ;;  %v1731_v61 = vld [vmem:[%s2298_s10] ss:$0 sm:$0xff]  ;;  %v1223_v2 = vld [vmem:[%s2303_s15 + $0x8] sm:$0xff] }
  0x1a   : > { %1899 = vmatprep.subr.bf16.mxu1 %v1959_v3  ;;  %v713_v16 = vld [vmem:[%s700_s0] sm:$0xff]  ;;  %v1221_v6 = vld [vmem:[%s2302_s14 + $0x8] sm:$0xff]  ;;  %s712_s3 = scalar_lea.vmem %s2336_s22, %s1722_s2 }
  0x1b   : > { %v722_v19 = vsub.f32 %v713_v16, %v1724_v15  ;;  %v1378_v21 = vld [vmem:[%s708_s26] sm:$0xf]  ;;  %s2335_s26 = sld [smem:[#allocation11_spill]] }
  0x1c   : > { %s704_s24 = scalar_lea.vmem %s2331_s4, %s1720_s5  ;;  %1895 = vmatpush3.bf16.msra.mxu0 %v1894_v12  ;;  %v1222_v1 = vld [vmem:[%s2303_s15] sm:$0xff] }
  0x1d   : > { %v714_v18 = vld [vmem:[%s704_s24] sm:$0xff]  ;;  %1901 = vmatpush3.bf16.msra.mxu1 %v1900_v14  ;;  %1902 = vmatprep.subr.bf16.mxu0 %v1959_v3  ;;  %v730_v20 = vmul.f32 %v1725_v17, %v722_v19  ;;  %v1927_v4 = vpack.c.bf16 %v1223_v2, %v1222_v1  ;;  %v1462_v19 = vld [vmem:[%s2305_s17 + $0x8] sm:$0xff] }
  0x1e   : > { %815 = vperm.xlu0 %1950, %v714_v18   ;;  %1908 = vmatprep.subr.bf16.mxu1 %v1959_v3  ;;  %v1220_v5 = vld [vmem:[%s2302_s14] sm:$0xff] }
  0x1f   : > { %1800 = vmatmul.mubr.msk.f32.vlgmr.msra.gmra.mrb[0].mxu0 %vm739_vm1, %v730_v20  ;;  %v1930_v7 = vpack.c.bf16 %v1221_v6, %v1220_v5  ;;  %v1734_v14 = vld [vmem:[%s2301_s13] ss:$0 sm:$0xff] }
  0x20   : > { %1811 = vmatmul.mubr.msk.f32.vlgmr.msra.gmra.mrb[0].mxu1 %vm739_vm1, %v730_v20  ;;  %1821 = vmatprep.mubr.msk.f32.mxu0 %vm1960_vm0, %v1961_v11  ;;  %v1461_v18 = vld [vmem:[%s2305_s17] sm:$0xff] }
  0x21   : > { %1832 = vmatprep.mubr.msk.f32.mxu1 %vm1960_vm0, %v1961_v11  ;;  %1904 = vmatpush3.bf16.msra.mxu0 %v1903_v25  ;;  %v1933_v20 = vpack.c.bf16 %v1462_v19, %v1461_v18  ;;  %v1737_v28 = vld [vmem:[%s2304_s16] ss:$0 sm:$0xff] }
  0x22   : > { %1382 = vperm.xlu0 %1950, %v1378_v21   ;;  %1910 = vmatpush3.bf16.msra.mxu1 %v1909_v27  ;;  %v1379_v21 = vlaneseq  ;;  %v1743_v46 = vld [vmem:[%s2335_s26] ss:$0 sm:$0xff] }
  0x23   : > { %1905 = vmatprep.subr.bf16.mxu0 %v1959_v3  ;;  %1911 = vmatprep.subr.bf16.mxu1 %v1959_v3 }
  0x24   : > { %v1380_v27 = vand.u32 127, %v1379_v21 }
  0x25   : > { %1907 = vmatpush3.bf16.msra.mxu0 %v1906_v30 }
  0x26   : > { %1913 = vmatpush3.bf16.msra.mxu1 %v1912_v33  ;;  %1914 = vmatprep.subr.bf16.mxu0 %v1959_v3 }
  0x27   : > { %1920 = vmatprep.subr.bf16.mxu1 %v1959_v3 }
  0x9d   : > { %v2175_v34 = vpop.permute.xlu0 %815 }
  0xa1   : > { %v1383_v29 = vpop.permute.xlu0 %1382 }
  0xa2   : > { %vm1384_vm3 = vcmp.eq.s32.totalorder %v1380_v27, %v1383_v29 }
  0xa3   : > { %v1738_v33 = vsel %vm1384_vm3, 1.0, %v1961_v11 }
  0xf2   : > { %v809_v35 = vpop.f32.mrb[0].mxu0 }
  0xf3   : > { %v885_v36 = vpop.f32.mrb[0].mxu1  ;;  %v818_v37 = vmul.f32 %v2175_v34, %v809_v35  ;;  %v1801_v38 = vpop.f32.mrb[1].mxu0 }
  0xf4   : > { %v1812_v39 = vpop.f32.mrb[1].mxu1 }
  0xf5   : > { %v886_v41 = vadd.f32 %v885_v36, %v818_v37  ;;  %v1554_v36 = vld [vmem:[%s2308_s20] sm:$0xff]  ;;  %v1555_v37 = vld [vmem:[%s2308_s20 + $0x8] sm:$0xff] }
  0xf6   : > { %v1936_v38 = vpack.c.bf16 %v1555_v37, %v1554_v36 }
  0xf7   : > { %v896_v42 = vadd.f32 %v1728_v40, %v886_v41  ;;  %v1742_v41 = vld [vmem:[%s2334_s1] ss:$0 sm:$0xff] }
  0xf9   : > { %v897_v43 = vmax.f32 %v896_v42, 0.0 }
  0xfb   : > { %1822 = vmatmul.mubr.msk.f32.vlgmr.msra.gmra.mrb[2].mxu0 %vm739_vm1, %v897_v43  ;;  %1833 = vmatmul.mubr.msk.f32.vlgmr.msra.gmra.mrb[2].mxu1 %vm739_vm1, %v897_v43 }
  0xfc   : > { %1843 = vmatprep.mubr.msk.f32.mxu0 %vm1960_vm0, %v1961_v11  ;;  %1854 = vmatprep.mubr.msk.f32.mxu1 %vm1960_vm0, %v1961_v11 }
  0xfd   : > { %1916 = vmatpush3.bf16.msra.mxu0 %v1915_v47  ;;  %1922 = vmatpush3.bf16.msra.mxu1 %v1921_v49 }
  0xfe   : > { %1917 = vmatprep.subr.bf16.mxu0 %v1959_v3  ;;  %1923 = vmatprep.subr.bf16.mxu1 %v1959_v3 }
 0x101   : > { %1919 = vmatpush3.bf16.msra.mxu0 %v1918_v52  ;;  %1925 = vmatpush3.bf16.msra.mxu1 %v1924_v55 }
 0x102   : > { %1926 = vmatprep.subr.bf16.mxu0 %v1959_v3  ;;  %1929 = vmatprep.subr.bf16.mxu1 %v1959_v3 }
 0x1ce   : > { %v975_v56 = vpop.f32.mrb[2].mxu0  ;;  %v1046_v57 = vpop.f32.mrb[2].mxu1 }
 0x1cf   : > { %v979_v58 = vmul.f32 %v975_v56, %v2175_v34  ;;  %v1823_v59 = vpop.f32.mrb[3].mxu0  ;;  %v1834_v60 = vpop.f32.mrb[3].mxu1 }
 0x1d1   : > { %v1047_v62 = vadd.f32 %v1046_v57, %v979_v58 }
 0x1d3   : > { %v1057_v63 = vadd.f32 %v1731_v61, %v1047_v62 }
 0x1d5   : > { %v1058_v0 = vmax.f32 %v1057_v63, 0.0 }
 0x1d7   : > { %1844 = vmatmul.mubr.msk.f32.vlgmr.msra.gmra.mrb[4].mxu0 %vm739_vm1, %v1058_v0  ;;  %1855 = vmatmul.mubr.msk.f32.vlgmr.msra.gmra.mrb[4].mxu1 %vm739_vm1, %v1058_v0 }
 0x1d8   : > { %1861 = vmatprep.mubr.msk.f32.mxu0 %vm1960_vm0, %v1961_v11  ;;  %1868 = vmatprep.mubr.msk.f32.mxu1 %vm1960_vm0, %v1961_v11 }
 0x1d9   : > { %1928 = vmatpush3.bf16.msra.mxu0 %v1927_v4  ;;  %1931 = vmatpush3.bf16.msra.mxu1 %v1930_v7 }
 0x1da   : > { %1871 = vmatprep.subr.mxu0 %v1961_v11  ;;  %1932 = vmatprep.subr.bf16.mxu1 %v1959_v3 }
 0x2aa   : > { %v1136_v8 = vpop.f32.mrb[4].mxu0  ;;  %v1207_v9 = vpop.f32.mrb[4].mxu1 }
 0x2ab   : > { %v1140_v10 = vmul.f32 %v1136_v8, %v2175_v34  ;;  %v1845_v12 = vpop.f32.mrb[5].mxu0  ;;  %v1856_v13 = vpop.f32.mrb[5].mxu1 }
 0x2ad   : > { %v1208_v15 = vadd.f32 %v1207_v9, %v1140_v10 }
 0x2af   : > { %v1218_v16 = vadd.f32 %v1734_v14, %v1208_v15 }
 0x2b1   : > { %v1219_v17 = vmax.f32 %v1218_v16, 0.0 }
 0x2b3   : > { %1862 = vmatmul.mubr.msk.f32.vlgmr.msra.gmra.mrb[6].mxu0 %vm1224_vm2, %v1219_v17  ;;  %1869 = vmatmul.mubr.msk.f32.vlgmr.msra.gmra.mrb[6].mxu1 %vm1224_vm2, %v1219_v17 }
 0x2b4   : > { %1873 = vmatprep.mubr.msk.f32.mxu0 %vm1960_vm0, %v1961_v11  ;;  %1880 = vmatprep.mubr.msk.f32.mxu1 %vm1960_vm0, %v1961_v11 }
 0x2b5   : > { %1934 = vmatpush3.bf16.msra.mxu1 %v1933_v20 }
 0x386   : > { %v1294_v22 = vpop.f32.mrb[6].mxu0  ;;  %v1365_v23 = vpop.f32.mrb[6].mxu1 }
 0x387   : > { %v1298_v24 = vmul.f32 %v1294_v22, %v2175_v34  ;;  %v1863_v25 = vpop.f32.mrb[7].mxu0  ;;  %v1870_v26 = vpop.f32.mrb[7].mxu1 }
 0x389   : > { %v1366_v30 = vadd.f32 %v1365_v23, %v1298_v24 }
 0x38b   : > { %v1376_v31 = vadd.f32 %v1737_v28, %v1366_v30 }
 0x38d   : > { %v1377_v32 = vmax.f32 %v1376_v31, 0.0 }
 0x38f   : > { %1872 = vmatpush3.msra.mxu0 %v1377_v32 }
 0x390   : > { %1874 = vmatmul.mubr.msk.f32.vlgmr.msra.gmra.mrb[8].mxu0 %vm1387_vm4, %v1738_v33  ;;  %1935 = vmatprep.subr.bf16.mxu0 %v1959_v3  ;;  %v1740_v3 = vld [vmem:[%s2306_s18] ss:$0 sm:$0xff] }
 0x391   : > { %1887 = vmatprep.mubr.msk.f32.mxu0 %vm1960_vm0, %v1961_v11  ;;  %1937 = vmatpush3.bf16.msra.mxu0 %v1936_v38 }
 0x463   : > { %v1457_v34 = vpop.f32.mrb[8].mxu0 }
 0x464   : > { %v1875_v35 = vpop.f32.mrb[9].mxu0  ;;  %1881 = vmatmul.mubr.msk.f32.vlgmr.msra.gmra.mrb[8].mxu1 %vm1224_vm2, %v1457_v34 }
 0x537   : > { %v1539_v11 = vpop.f32.mrb[8].mxu1 }
 0x538   : > { %v1540_v39 = vadd.f32 %v1740_v3, %v1539_v11  ;;  %v1882_v40 = vpop.f32.mrb[9].mxu1 }
 0x53a   : > { %v1545_v42 = vmin.f32 %v1540_v39, 0.0  ;;  %v1543_v43 = vmax.f32 %v1540_v39, 0.0 }
 0x53c   : > { %v1552_v44 = vmul.f32 %v1742_v41, %v1545_v42 }
 0x53e   : > { %v1553_v45 = vadd.f32 %v1552_v44, %v1543_v43 }
 0x540   : > { %1888 = vmatmul.mubr.msk.f32.vlgmr.msra.gmra.mrb[10].mxu0 %vm1224_vm2, %v1553_v45 }
 0x613   : > { %v1632_v47 = vpop.f32.mrb[10].mxu0 }
 0x614   : > { %v1633_v48 = vadd.f32 %v1743_v46, %v1632_v47  ;;  %v1889_v49 = vpop.f32.mrb[11].mxu0 }
 0x616   : > { %1637 = vst.msk [vmem:[%s712_s3] sm:$0xf] %vm1636_vm5, %v1633_v48 }
 0x617 PF: > { %s2337_s4 = sld [smem:[#allocation2_spill]] }
 0x61d   : > { %s32_s3 = sadd.s32 1, %s2337_s4  }
 0x61e   : > { %p29_p4 = scmp.ge.s32.totalorder %s32_s3, 8  }
 0x620   :  { %31 = sbr.rel (!%p29_p4) target bundleno = 11 (0xb), region = 144 }

</bundles_post_ra>
